<compile_context>
chip_gen: v7x
topology: tpu7x:2x2x1
jax: 0.10.0
libtpu: 0.0.40
codegen_flags: <defaults>
</compile_context>

<pallas_src>
import functools

import jax
import jax.numpy as jnp
from jax.experimental import pallas as pl
from jax.experimental.pallas import tpu as pltpu


def _round_up(x, m):
    return ((x + m - 1) // m) * m


# ----------------------------------------------------------------------------- kernel ---
def glu_layer_kernel(x_ref, w_ref, gb_ref, o_ref, *,
                     chunks_per_step, vbs, out_p, out_dim, eps):
    # x_ref : (rows, in_dim_p)      rows = chunks_per_step * vbs (several ghost batches)
    # w_ref : (in_dim_p, 2*out_p)   pre-transposed, halves packed as [W_a_pad | W_b_pad]
    # gb_ref: (2, 2*out_p)          row 0 = gamma (pad=1), row 1 = beta (pad=0)
    # o_ref : (rows, out_dim)       unpadded output
    rows = chunks_per_step * vbs
    n = 2 * out_p

    # MXU matmul in the input's native dtype; f32 accumulation.
    y = jnp.dot(x_ref[...], w_ref[...], preferred_element_type=jnp.float32)  # (rows, n)

    # Ghost Batch Norm: per-virtual-batch statistics (training-mode BatchNorm1d, biased
    # variance).  vbs is a multiple of 8 -> sublane-aligned reshape.
    y3 = y.reshape(chunks_per_step, vbs, n)
    mean = jnp.mean(y3, axis=1, keepdims=True)                    # (c, 1, n)
    # One-pass variance E[y^2] - mean^2: one fewer full-width VPU subtract pass; the
    # extra reduce sits on the XLU slot.  Clamp at 0 to guard against cancellation.
    mean_sq = jnp.mean(y3 * y3, axis=1, keepdims=True)            # (c, 1, n)
    var = jnp.maximum(mean_sq - mean * mean, 0.0)

    gb = gb_ref[...].astype(jnp.float32)                          # (2, n)
    gamma = gb[0:1, :].reshape(1, 1, n)
    beta = gb[1:2, :].reshape(1, 1, n)

    # Fold the BN affine into one scale/shift: y_bn = y * scale + shift.
    scale = gamma * jax.lax.rsqrt(var + eps)                      # (c, 1, n)  (EUP rsqrt)
    shift = beta - mean * scale
    y_bn = (y3 * scale + shift).reshape(rows, n)

    # GLU gating on lane-aligned halves (out_p is a multiple of 128).  Sigmoid via
    # EUP exp + approximate EUP reciprocal (keeps the VPU slot free).
    a = y_bn[:, :out_p]
    b = y_bn[:, out_p:]
    gate = pl.reciprocal(1.0 + jnp.exp(-b), approx=True)
    o_ref[...] = (a[:, :out_dim] * gate[:, :out_dim]).astype(o_ref.dtype)


# ------------------------------------------------------------------- one-time packing ---
def pack_glu_params(w, gamma, beta, *, output_dim, x_dtype=jnp.float32):
    """One-time parameter packing.  Call at setup, NOT per forward pass."""
    two_out, input_dim = w.shape
    assert two_out == 2 * output_dim
    out_p = _round_up(output_dim, 128)
    pad = out_p - output_dim

    # Pad K (contraction dim) to a multiple of 128 only when the relative padding is
    # small (<= 25%); for tiny input_dim the extra HBM read bytes would hurt.
    in_dim_p = _round_up(input_dim, 128)
    if in_dim_p > input_dim and 4 * in_dim_p > 5 * input_dim:
        in_dim_p = input_dim
    k_pad = in_dim_p - input_dim

    w_t = w.T                                                     # (in, 2*out)
    w_a = jnp.pad(w_t[:, :output_dim], ((0, k_pad), (0, pad)))
    w_b = jnp.pad(w_t[:, output_dim:], ((0, k_pad), (0, pad)))
    # Cast to the activation dtype so bf16 activations hit the bf16 MXU path.
    w_packed = jnp.concatenate([w_a, w_b], axis=1).astype(x_dtype)  # (in_dim_p, 2*out_p)

    g_a = jnp.pad(gamma[:output_dim], (0, pad), constant_values=1.0)
    g_b = jnp.pad(gamma[output_dim:], (0, pad), constant_values=1.0)
    b_a = jnp.pad(beta[:output_dim], (0, pad))
    b_b = jnp.pad(beta[output_dim:], (0, pad))
    gb = jnp.stack([jnp.concatenate([g_a, g_b]),
                    jnp.concatenate([b_a, b_b])], axis=0).astype(jnp.float32)  # (2, 2*out_p)
    return w_packed, gb


# ------------------------------------------------------------------------- heuristics ---
def _min_grid_steps():
    """Keep >= 2 grid steps only on chips with 2 TensorCores (v7x-style)."""
    try:
        kind = jax.devices()[0].device_kind.lower()
    except Exception:  # pragma: no cover
        return 1
    return 2 if "v7" in kind else 1


def _vmem_estimate(rows, in_dim_p, n, out_dim, x_item, o_item, w_item):
    in_l = _round_up(in_dim_p, 128)     # lane-padded VMEM footprint
    out_l = _round_up(out_dim, 128)
    return (in_l * n * w_item           # resident packed weight (single buffer)
            + 2 * n * 4                 # gamma / beta
            + 2 * rows * in_l * x_item  # double-buffered x tile
            + 2 * rows * out_l * o_item  # double-buffered out tile
            + 2 * rows * n * 4)         # f32 temporaries (y, y_bn)


def _choose_chunks_per_step(batch, vbs, in_dim_p, n, out_dim,
                            x_item, o_item, w_item, min_grid_steps):
    num_chunks = batch // vbs
    sub = max(8, 32 // x_item)          # sublane multiple (8 f32, 16 bf16, 32 int8)

    # HBM-traffic target: ~2 MiB of x-tile + out-tile bytes per grid step.
    bytes_per_row = in_dim_p * x_item + out_dim * o_item
    target_rows = max(sub, (2 << 20) // bytes_per_row)

    # VMEM budget: keep the estimate under ~24 MiB so it fits the v7x default scoped
    # VMEM (32 MiB of 64 MiB physical) with headroom.
    budget = 24 << 20
    while (target_rows > sub and
           _vmem_estimate(target_rows, in_dim_p, n, out_dim, x_item, o_item, w_item) > budget):
        target_rows //= 2
    target_rows = min(target_rows, batch)

    cps_max = max(1, min(num_chunks, target_rows // vbs))
    while cps_max > 1 and num_chunks // cps_max < min_grid_steps:
        cps_max -= 1

    best, fallback = None, 1
    for c in range(cps_max, 0, -1):
        if num_chunks % c == 0:
            if fallback == 1:
                fallback = c
            if (c * vbs) % sub == 0:
                best = c
                break
    return best if best is not None else fallback


def _resident_spec(shape):
    """Grid-invariant block: request single buffering when this JAX supports it."""
    index_map = lambda i: (0, 0)
    try:
        return pl.BlockSpec(shape, index_map, pipeline_mode=pl.Buffered(1))
    except (AttributeError, TypeError):  # older JAX: fall back to default buffering
        return pl.BlockSpec(shape, index_map)


# ---------------------------------------------------------------------------- wrapper ---
def glu_layer(x, w_packed, gb, *, output_dim, virtual_batch_size, eps=1e-5,
              chunks_per_step=None):
    batch, input_dim = x.shape
    in_dim_p, n = w_packed.shape
    out_p = n // 2
    assert out_p == _round_up(output_dim, 128)
    # TODO(synk): torch.chunk allows a smaller ragged final ghost batch; not handled here.
    assert batch % virtual_batch_size == 0, "demo assumes batch divisible by virtual batch"
    assert virtual_batch_size % 8 == 0, "virtual batch must be a multiple of 8 (sublane tile)"
    num_chunks = batch // virtual_batch_size

    # K was padded at pack time; mirror it on the activations.
    if in_dim_p != input_dim:
        x = jnp.pad(x, ((0, 0), (0, in_dim_p - input_dim)))

    out_dtype = x.dtype
    x_item = jnp.dtype(x.dtype).itemsize
    o_item = jnp.dtype(out_dtype).itemsize
    w_item = jnp.dtype(w_packed.dtype).itemsize

    if chunks_per_step is None:
        chunks_per_step = _choose_chunks_per_step(
            batch, virtual_batch_size, in_dim_p, n, output_dim,
            x_item, o_item, w_item, _min_grid_steps())
    assert num_chunks % chunks_per_step == 0
    rows = chunks_per_step * virtual_batch_size
    grid = (num_chunks // chunks_per_step,)

    needed = _vmem_estimate(rows, in_dim_p, n, output_dim, x_item, o_item, w_item)
    vmem_limit = int(min(max(2 * needed, 32 << 20), 64 << 20))

    kernel = functools.partial(
        glu_layer_kernel,
        chunks_per_step=chunks_per_step,
        vbs=virtual_batch_size,
        out_p=out_p,
        out_dim=output_dim,
        eps=eps,
    )

    return pl.pallas_call(
        kernel,
        out_shape=jax.ShapeDtypeStruct((batch, output_dim), out_dtype),
        grid=grid,
        in_specs=[
            pl.BlockSpec((rows, in_dim_p), lambda i: (i, 0)),
            _resident_spec((in_dim_p, n)),     # resident packed weight
            _resident_spec((2, n)),            # resident gamma/beta
        ],
        out_specs=pl.BlockSpec((rows, output_dim), lambda i: (i, 0)),  # unpadded store
        compiler_params=pltpu.CompilerParams(
            dimension_semantics=("parallel",),
            vmem_limit_bytes=vmem_limit,
        ),
    )(x, w_packed, gb)


def init_glu_weight(key, input_dim, output_dim):
    """Deterministic equivalent of initialize_glu (xavier_normal_ with custom gain)."""
    two_out = 2 * output_dim
    gain = jnp.sqrt((input_dim + two_out) / jnp.sqrt(float(input_dim)))
    std = gain * jnp.sqrt(2.0 / (input_dim + two_out))
    return std * jax.random.normal(key, (two_out, input_dim), dtype=jnp.float32)


# ------------------------------------------------------------------------------- demo ---
if __name__ == "__main__":
    batch = 32
    input_dim = 16
    output_dim = 8
    vbs = 8  # 4 ghost-batch chunks

    key = jax.random.PRNGKey(0)
    kx, kw = jax.random.split(key)

    x = jax.random.normal(kx, (batch, input_dim), dtype=jnp.float32)
    w = init_glu_weight(kw, input_dim, output_dim)
    gamma = jnp.ones((2 * output_dim,), dtype=jnp.float32)   # BatchNorm1d weight init
    beta = jnp.zeros((2 * output_dim,), dtype=jnp.float32)   # BatchNorm1d bias init

    # One-time parameter packing (hoisted out of the forward path).
    w_packed, gb = pack_glu_params(w, gamma, beta, output_dim=output_dim, x_dtype=x.dtype)

    out = glu_layer(x, w_packed, gb, output_dim=output_dim, virtual_batch_size=vbs)
    out = jax.block_until_ready(out)

    # Pure-JAX reference check (same semantics as the PyTorch module forward).
    y = x @ w.T
    chunks = []
    for c in range(batch // vbs):
        yc = y[c * vbs:(c + 1) * vbs]
        m = yc.mean(axis=0, keepdims=True)
        v = ((yc - m) ** 2).mean(axis=0, keepdims=True)
        chunks.append((yc - m) / jnp.sqrt(v + 1e-5) * gamma + beta)
    ybn = jnp.concatenate(chunks, axis=0)
    ref = ybn[:, :output_dim] * jax.nn.sigmoid(ybn[:, output_dim:])
    # Tolerance accounts for the approximate EUP reciprocal in the sigmoid.
    assert jnp.allclose(out, ref, atol=5e-3, rtol=5e-3), float(jnp.max(jnp.abs(out - ref)))

    print("KERNEL_OK")
</pallas_src>

<mosaic_0001>
module attributes {stable_mosaic.version = 11 : i64} {
  func.func @glu_layer_kernel(%arg0: i32, %arg1: memref<32x16xf32, #tpu.memory_space<vmem>>, %arg2: memref<16x256xf32, #tpu.memory_space<vmem>>, %arg3: memref<2x256xf32, #tpu.memory_space<vmem>>, %arg4: memref<32x8xf32, #tpu.memory_space<vmem>>) attributes {dimension_semantics = [#tpu.dimension_semantics<parallel>], iteration_bounds = array<i64: 1>, scalar_prefetch = 0 : i64, scratch_operands = 0 : i64, tpu.core_type = #tpu.core_type<tc>, window_params = [{transform_indices = @transform_0, window_bounds = array<i64: 32, 16>}, {pipeline_mode = #tpu.pipeline_mode<synchronous>, transform_indices = @transform_1, window_bounds = array<i64: 16, 256>}, {pipeline_mode = #tpu.pipeline_mode<synchronous>, transform_indices = @transform_2, window_bounds = array<i64: 2, 256>}, {transform_indices = @transform_3, window_bounds = array<i64: 32, 8>}]} {
    %c0 = arith.constant 0 : index
    %c0_0 = arith.constant 0 : index
    %0 = vector.load %arg1[%c0, %c0_0] : memref<32x16xf32, #tpu.memory_space<vmem>>, vector<32x16xf32>
    %c0_1 = arith.constant 0 : index
    %c0_2 = arith.constant 0 : index
    %1 = vector.load %arg2[%c0_1, %c0_2] : memref<16x256xf32, #tpu.memory_space<vmem>>, vector<16x256xf32>
    %cst = arith.constant dense<0.000000e+00> : vector<32x256xf32>
    %2 = tpu.matmul %0, %1, %cst {dimension_numbers = #tpu.dot_dimension_numbers<[1], [0], [0], [1], [0, 0, 1, 1], [], []>} : vector<32x16xf32>, vector<16x256xf32>, vector<32x256xf32> -> vector<32x256xf32>
    %3 = vector.shape_cast %2 : vector<32x256xf32> to vector<4x8x256xf32>
    %cst_3 = arith.constant dense<0.000000e+00> : vector<4x256xf32>
    %4 = vector.multi_reduction <add>, %3, %cst_3 [1] : vector<4x8x256xf32> to vector<4x256xf32>
    %5 = vector.shape_cast %4 : vector<4x256xf32> to vector<4x1x256xf32>
    %cst_4 = arith.constant 8.000000e+00 : f32
    %6 = vector.broadcast %cst_4 : f32 to vector<4x1x256xf32>
    %7 = arith.divf %5, %6 : vector<4x1x256xf32>
    %8 = arith.mulf %3, %3 : vector<4x8x256xf32>
    %cst_5 = arith.constant dense<0.000000e+00> : vector<4x256xf32>
    %9 = vector.multi_reduction <add>, %8, %cst_5 [1] : vector<4x8x256xf32> to vector<4x256xf32>
    %10 = vector.shape_cast %9 : vector<4x256xf32> to vector<4x1x256xf32>
    %cst_6 = arith.constant 8.000000e+00 : f32
    %11 = vector.broadcast %cst_6 : f32 to vector<4x1x256xf32>
    %12 = arith.divf %10, %11 : vector<4x1x256xf32>
    %13 = arith.mulf %7, %7 : vector<4x1x256xf32>
    %14 = arith.subf %12, %13 : vector<4x1x256xf32>
    %cst_7 = arith.constant 0.000000e+00 : f32
    %15 = vector.broadcast %cst_7 : f32 to vector<4x1x256xf32>
    %16 = arith.maximumf %14, %15 : vector<4x1x256xf32>
    %c0_8 = arith.constant 0 : index
    %c0_9 = arith.constant 0 : index
    %17 = vector.load %arg3[%c0_8, %c0_9] : memref<2x256xf32, #tpu.memory_space<vmem>>, vector<2x256xf32>
    %18 = vector.extract_strided_slice %17 {offsets = [0, 0], sizes = [1, 256], strides = [1, 1]} : vector<2x256xf32> to vector<1x256xf32>
    %19 = vector.shape_cast %18 : vector<1x256xf32> to vector<1x1x256xf32>
    %20 = vector.extract_strided_slice %17 {offsets = [1, 0], sizes = [1, 256], strides = [1, 1]} : vector<2x256xf32> to vector<1x256xf32>
    %21 = vector.shape_cast %20 : vector<1x256xf32> to vector<1x1x256xf32>
    %cst_10 = arith.constant 9.99999974E-6 : f32
    %22 = vector.broadcast %cst_10 : f32 to vector<4x1x256xf32>
    %23 = arith.addf %16, %22 : vector<4x1x256xf32>
    %24 = math.rsqrt %23 : vector<4x1x256xf32>
    %25 = vector.broadcast %19 : vector<1x1x256xf32> to vector<4x1x256xf32>
    %26 = arith.mulf %25, %24 : vector<4x1x256xf32>
    %27 = arith.mulf %7, %26 : vector<4x1x256xf32>
    %28 = vector.broadcast %21 : vector<1x1x256xf32> to vector<4x1x256xf32>
    %29 = arith.subf %28, %27 : vector<4x1x256xf32>
    %30 = vector.broadcast %26 : vector<4x1x256xf32> to vector<4x8x256xf32>
    %31 = arith.mulf %3, %30 : vector<4x8x256xf32>
    %32 = vector.broadcast %29 : vector<4x1x256xf32> to vector<4x8x256xf32>
    %33 = arith.addf %31, %32 : vector<4x8x256xf32>
    %34 = vector.shape_cast %33 : vector<4x8x256xf32> to vector<32x256xf32>
    %35 = vector.extract_strided_slice %34 {offsets = [0, 0], sizes = [32, 128], strides = [1, 1]} : vector<32x256xf32> to vector<32x128xf32>
    %36 = vector.extract_strided_slice %34 {offsets = [0, 128], sizes = [32, 128], strides = [1, 1]} : vector<32x256xf32> to vector<32x128xf32>
    %cst_11 = arith.constant 0.000000e+00 : f32
    %37 = vector.broadcast %cst_11 : f32 to vector<32x128xf32>
    %38 = arith.subf %37, %36 : vector<32x128xf32>
    %39 = math.exp %38 : vector<32x128xf32>
    %cst_12 = arith.constant 1.000000e+00 : f32
    %40 = vector.broadcast %cst_12 : f32 to vector<32x128xf32>
    %41 = arith.addf %40, %39 : vector<32x128xf32>
    %42 = tpu.reciprocal %41 {approx = true} : vector<32x128xf32> -> vector<32x128xf32>
    %43 = vector.extract_strided_slice %35 {offsets = [0, 0], sizes = [32, 8], strides = [1, 1]} : vector<32x128xf32> to vector<32x8xf32>
    %44 = vector.extract_strided_slice %42 {offsets = [0, 0], sizes = [32, 8], strides = [1, 1]} : vector<32x128xf32> to vector<32x8xf32>
    %45 = arith.mulf %43, %44 : vector<32x8xf32>
    %c0_13 = arith.constant 0 : index
    %c0_14 = arith.constant 0 : index
    %46 = vector.load %arg4[%c0_13, %c0_14] : memref<32x8xf32, #tpu.memory_space<vmem>>, vector<32x8xf32>
    tpu.vector_store %arg4[%c0_13, %c0_14], %45 {strides = array<i32>} : memref<32x8xf32, #tpu.memory_space<vmem>>, vector<32x8xf32>,
    return
  }
  func.func @transform_0(%arg0: i32) -> (i32, i32) {
    %c0_i32 = arith.constant 0 : i32
    %c0_i32_0 = arith.constant 0 : i32
    return %arg0, %c0_i32 : i32, i32
  }
  func.func @transform_1(%arg0: i32) -> (i32, i32) {
    %c0_i32 = arith.constant 0 : i32
    %c0_i32_0 = arith.constant 0 : i32
    %c0_i32_1 = arith.constant 0 : i32
    return %c0_i32, %c0_i32_0 : i32, i32
  }
  func.func @transform_2(%arg0: i32) -> (i32, i32) {
    %c0_i32 = arith.constant 0 : i32
    %c0_i32_0 = arith.constant 0 : i32
    %c0_i32_1 = arith.constant 0 : i32
    return %c0_i32, %c0_i32_0 : i32, i32
  }
  func.func @transform_3(%arg0: i32) -> (i32, i32) {
    %c0_i32 = arith.constant 0 : i32
    %c0_i32_0 = arith.constant 0 : i32
    return %arg0, %c0_i32 : i32, i32
  }
}

</mosaic_0001>

<bundles_post_ra>
// kernel: tpu_custom_call.1
= control target key start
LH: loop header
LB: loop body
LE: loop exit
PB: predicated region body
PF: predicated region fallthrough
CT: control target
= control target key end

     0   :  { %v639_v3 = vmov 0.0   ;;  %vm22_vm0 = vcmask 130048   ;;  %v640_v11 = vmov 1983009808   ;;  %v298_v13 = vlaneseq  ;;  %s878_s1 = inlined_call_operand.vmem [shape: f32[16,256], index: 1, kind: input, shape index: {}]   ;;  %s879_s0 = inlined_call_operand.vmem [shape: f32[32,16], index: 0, kind: input, shape index: {}]   ;;  %s880_s2 = inlined_call_operand.vmem [shape: f32[2,256], index: 2, kind: input, shape index: {}]   ;;  %s881_s3 = inlined_call_operand.vmem [shape: f32[32,8], index: 3, kind: output, shape index: {}]  }
   0x1   :  { %v19_v0 = vld [vmem:[%s878_s1 + $0x8] sm:$0xff]  ;;  %v21_v1 = vld [vmem:[%s878_s1 + $0x18] sm:$0xff]  ;;  %v18_v2 = vld [vmem:[%s878_s1] sm:$0xff]  ;;  %99 = vmatprep.mubr.f32.mxu0 %v639_v3  ;;  %111 = vmatprep.mubr.f32.mxu1 %v639_v3  ;;  %v685_v12 = vunpack.c.l.s4 %v640_v11  ;;  %vm586_vm1 = vcmask 64512  }
   0x2   :  { %v599_v4 = vpack.c.bf16 %v21_v1, %v19_v0  ;;  %v20_v5 = vld [vmem:[%s878_s1 + $0x10] sm:$0xff]  ;;  %v14_v7 = vld [vmem:[%s879_s0] sm:$0xff]  ;;  %v15_v9 = vld [vmem:[%s879_s0 + $0x8] sm:$0xff]  ;;  %v692_v17 = vshrl.u32 %v298_v13, 7 }
   0x3   :  { %v601_v6 = vpack.c.bf16 %v20_v5, %v18_v2  ;;  %v16_v8 = vld [vmem:[%s879_s0 + $0x10] sm:$0xff]  ;;  %v17_v10 = vld [vmem:[%s879_s0 + $0x18] sm:$0xff]  ;;  %v297_v16 = vunpack.c.0.s8 %v685_v12 }
   0x4   :  { %600 = vmatprep.subr.bf16.mxu0 %v599_v4  ;;  %603 = vmatprep.subr.bf16.mxu1 %v599_v4 }
   0x5   :  { %602 = vmatpush1.bf16.msra.mxu0 %v601_v6  ;;  %604 = vmatpush1.bf16.msra.mxu1 %v601_v6 }
   0x8   :  { %595 = vmatmul.mubr.msk.f32.vlgmr.msra.gmra.mrb[0].mxu0 %vm22_vm0, %v14_v7  ;;  %597 = vmatmul.mubr.msk.f32.vlgmr.msra.gmra.mrb[0].mxu1 %vm22_vm0, %v16_v8 }
   0x9   :  { %105 = vmatprep.mubr.f32.mxu0 %v639_v3  ;;  %117 = vmatprep.mubr.f32.mxu1 %v639_v3 }
   0xc   :  { %596 = vmatmul.mubr.msk.f32.gmra.mrb[2].mxu0 %vm22_vm0, %v15_v9  ;;  %598 = vmatmul.mubr.msk.f32.gmra.mrb[2].mxu1 %vm22_vm0, %v17_v10 }
  0xdb   :  { %v687_v14 = vpop.f32.mrb[0].mxu0  ;;  %v689_v15 = vpop.f32.mrb[0].mxu1 }
  0xdc   :  { %v124_v18 = vrot.slane %v687_v14, 4  ;;  %v181_v19 = vmul.f32 %v687_v14, %v687_v14  ;;  %v148_v20 = vrot.slane %v689_v15, 4  ;;  %v185_v21 = vmul.f32 %v689_v15, %v689_v15  ;;  %v700_v22 = vpop.f32.mrb[1].mxu0  ;;  %v702_v23 = vpop.f32.mrb[1].mxu1 }
  0xdd   :  { %v130_v24 = vrot.slane %v700_v22, 4  ;;  %v182_v25 = vmul.f32 %v700_v22, %v700_v22  ;;  %v154_v26 = vrot.slane %v702_v23, 4  ;;  %v186_v27 = vmul.f32 %v702_v23, %v702_v23 }
  0xde   :  { %v125_v28 = vadd.f32 %v124_v18, %v687_v14  ;;  %v189_v29 = vrot.slane %v181_v19, 4  ;;  %v149_v30 = vadd.f32 %v148_v20, %v689_v15  ;;  %v213_v31 = vrot.slane %v185_v21, 4 }
  0xdf   :  { %v131_v32 = vadd.f32 %v130_v24, %v700_v22  ;;  %v195_v33 = vrot.slane %v182_v25, 4  ;;  %v155_v34 = vadd.f32 %v154_v26, %v702_v23  ;;  %v219_v35 = vrot.slane %v186_v27, 4  ;;  %v714_v36 = vpop.f32.mrb[2].mxu0  ;;  %v716_v37 = vpop.f32.mrb[2].mxu1 }
  0xe0   :  { %v126_v38 = vrot.slane %v125_v28, 2  ;;  %v190_v39 = vadd.f32 %v189_v29, %v181_v19  ;;  %v150_v40 = vrot.slane %v149_v30, 2  ;;  %v214_v41 = vadd.f32 %v213_v31, %v185_v21  ;;  %v718_v42 = vpop.f32.mrb[3].mxu0  ;;  %v720_v43 = vpop.f32.mrb[3].mxu1 }
  0xe1   :  { %v132_v44 = vrot.slane %v131_v32, 2  ;;  %v196_v45 = vadd.f32 %v195_v33, %v182_v25  ;;  %v156_v46 = vrot.slane %v155_v34, 2  ;;  %v220_v47 = vadd.f32 %v219_v35, %v186_v27 }
  0xe2   :  { %v127_v48 = vadd.f32 %v126_v38, %v125_v28  ;;  %v191_v49 = vrot.slane %v190_v39, 2  ;;  %v151_v50 = vadd.f32 %v150_v40, %v149_v30  ;;  %v215_v51 = vrot.slane %v214_v41, 2 }
  0xe3   :  { %v133_v52 = vadd.f32 %v132_v44, %v131_v32  ;;  %v197_v53 = vrot.slane %v196_v45, 2  ;;  %v157_v54 = vadd.f32 %v156_v46, %v155_v34  ;;  %v221_v55 = vrot.slane %v220_v47, 2 }
  0xe4   :  { %v128_v56 = vrot.slane %v127_v48, 1  ;;  %v192_v57 = vadd.f32 %v191_v49, %v190_v39  ;;  %v152_v58 = vrot.slane %v151_v50, 1  ;;  %v216_v59 = vadd.f32 %v215_v51, %v214_v41 }
  0xe5   :  { %v134_v60 = vrot.slane %v133_v52, 1  ;;  %v198_v61 = vadd.f32 %v197_v53, %v196_v45  ;;  %v158_v62 = vrot.slane %v157_v54, 1  ;;  %v222_v63 = vadd.f32 %v221_v55, %v220_v47 }
  0xe6   :  { %v129_v0 = vadd.f32 %v128_v56, %v127_v48  ;;  %v193_v1 = vrot.slane %v192_v57, 1  ;;  %v153_v2 = vadd.f32 %v152_v58, %v151_v50  ;;  %v217_v3 = vrot.slane %v216_v59, 1 }
  0xe7   :  { %v135_v4 = vadd.f32 %v134_v60, %v133_v52  ;;  %v199_v5 = vrot.slane %v198_v61, 1  ;;  %v159_v6 = vadd.f32 %v158_v62, %v157_v54  ;;  %v223_v7 = vrot.slane %v222_v63, 1 }
  0xe8   :  { %v722_v8 = vmul.f32 0.125, %v129_v0  ;;  %v194_v9 = vadd.f32 %v193_v1, %v192_v57  ;;  %v724_v10 = vmul.f32 0.125, %v153_v2  ;;  %v218_v11 = vadd.f32 %v217_v3, %v216_v59 }
  0xe9   :  { %v726_v13 = vmul.f32 0.125, %v135_v4  ;;  %v200_v18 = vadd.f32 %v199_v5, %v198_v61  ;;  %v728_v19 = vmul.f32 0.125, %v159_v6  ;;  %v224_v20 = vadd.f32 %v223_v7, %v222_v63 }
  0xea   :  { %v237_v21 = vmul.f32 0.125, %v194_v9  ;;  %v245_v24 = vmul.f32 %v722_v8, %v722_v8  ;;  %v241_v25 = vmul.f32 0.125, %v218_v11  ;;  %v249_v26 = vmul.f32 %v724_v10, %v724_v10 }
  0xeb   :  { %v238_v27 = vmul.f32 0.125, %v200_v18  ;;  %v246_v28 = vmul.f32 %v726_v13, %v726_v13  ;;  %v242_v29 = vmul.f32 0.125, %v224_v20  ;;  %v250_v30 = vmul.f32 %v728_v19, %v728_v19 }
  0xec   :  { %v253_v31 = vsub.f32 %v237_v21, %v245_v24  ;;  %v257_v32 = vsub.f32 %v241_v25, %v249_v26  ;;  %v136_v33 = vrot.slane %v714_v36, 4  ;;  %v183_v34 = vmul.f32 %v714_v36, %v714_v36 }
  0xed   :  { %v254_v35 = vsub.f32 %v238_v27, %v246_v28  ;;  %v258_v38 = vsub.f32 %v242_v29, %v250_v30  ;;  %v160_v39 = vrot.slane %v716_v37, 4  ;;  %v187_v40 = vmul.f32 %v716_v37, %v716_v37 }
  0xee   :  { %v261_v41 = vmax.f32 %v253_v31, 0.0  ;;  %v265_v44 = vmax.f32 %v257_v32, 0.0  ;;  %v137_v45 = vadd.f32 %v136_v33, %v714_v36  ;;  %v201_v46 = vrot.slane %v183_v34, 4 }
  0xef   :  { %v262_v47 = vmax.f32 %v254_v35, 0.0  ;;  %v266_v48 = vmax.f32 %v258_v38, 0.0  ;;  %v161_v49 = vadd.f32 %v160_v39, %v716_v37  ;;  %v225_v50 = vrot.slane %v187_v40, 4 }
  0xf0   :  { %v270_v51 = vadd.f32 1e-05, %v261_v41  ;;  %v274_v52 = vadd.f32 1e-05, %v265_v44  ;;  %v138_v53 = vrot.slane %v137_v45, 2  ;;  %v202_v54 = vadd.f32 %v201_v46, %v183_v34 }
  0xf1   :  { %v271_v55 = vadd.f32 1e-05, %v262_v47  ;;  %v275_v56 = vadd.f32 1e-05, %v266_v48  ;;  %v162_v57 = vrot.slane %v161_v49, 2  ;;  %v226_v58 = vadd.f32 %v225_v50, %v187_v40 }
  0xf2   :  { %607 = vrsqrt.f32 %v270_v51  ;;  %v139_v59 = vadd.f32 %v138_v53, %v137_v45  ;;  %v203_v60 = vrot.slane %v202_v54, 2  ;;  %v142_v61 = vrot.slane %v718_v42, 4 }
  0xf3   :  { %609 = vrsqrt.f32 %v274_v52  ;;  %v163_v62 = vadd.f32 %v162_v57, %v161_v49  ;;  %v227_v63 = vrot.slane %v226_v58, 2  ;;  %v184_v0 = vmul.f32 %v718_v42, %v718_v42 }
  0xf4   :  { %611 = vrsqrt.f32 %v271_v55  ;;  %v140_v1 = vrot.slane %v139_v59, 1  ;;  %v204_v2 = vadd.f32 %v203_v60, %v202_v54  ;;  %v143_v3 = vadd.f32 %v142_v61, %v718_v42 }
  0xf5   :  { %613 = vrsqrt.f32 %v275_v56  ;;  %v164_v4 = vrot.slane %v163_v62, 1  ;;  %v228_v5 = vadd.f32 %v227_v63, %v226_v58  ;;  %v207_v6 = vrot.slane %v184_v0, 4 }
  0xf6   :  { %v141_v7 = vadd.f32 %v140_v1, %v139_v59  ;;  %v205_v9 = vrot.slane %v204_v2, 1  ;;  %v144_v11 = vrot.slane %v143_v3, 2  ;;  %v166_v18 = vrot.slane %v720_v43, 4 }
  0xf7   :  { %v165_v20 = vadd.f32 %v164_v4, %v163_v62  ;;  %v229_v21 = vrot.slane %v228_v5, 1  ;;  %v208_v24 = vadd.f32 %v207_v6, %v184_v0  ;;  %v188_v25 = vmul.f32 %v720_v43, %v720_v43 }
  0xf8   :  { %v753_v26 = vmul.f32 0.125, %v141_v7  ;;  %v206_v27 = vadd.f32 %v205_v9, %v204_v2  ;;  %v145_v28 = vadd.f32 %v144_v11, %v143_v3  ;;  %v167_v29 = vadd.f32 %v166_v18, %v720_v43 }
  0xf9   :  { %v756_v30 = vmul.f32 0.125, %v165_v20  ;;  %v230_v31 = vadd.f32 %v229_v21, %v228_v5  ;;  %v209_v32 = vrot.slane %v208_v24, 2  ;;  %v231_v33 = vrot.slane %v188_v25, 4 }
  0xfa   :  { %v239_v34 = vmul.f32 0.125, %v206_v27  ;;  %v247_v35 = vmul.f32 %v753_v26, %v753_v26  ;;  %v146_v38 = vrot.slane %v145_v28, 1  ;;  %v168_v39 = vrot.slane %v167_v29, 2 }
  0xfb   :  { %v243_v40 = vmul.f32 0.125, %v230_v31  ;;  %v251_v41 = vmul.f32 %v756_v30, %v756_v30  ;;  %v210_v44 = vadd.f32 %v209_v32, %v208_v24  ;;  %v232_v45 = vadd.f32 %v231_v33, %v188_v25 }
  0xfc   :  { %v608_v46 = vpop.eup %607  ;;  %v255_v47 = vsub.f32 %v239_v34, %v247_v35  ;;  %v147_v48 = vadd.f32 %v146_v38, %v145_v28  ;;  %v169_v49 = vadd.f32 %v168_v39, %v167_v29  ;;  %v765_v51 = vsub.s32 %v297_v16, %v692_v17  ;;  %v778_v16 = vld [vmem:[%s880_s2] sm:$0xf] }
  0xfd   :  { %v610_v50 = vpop.eup %609  ;;  %v259_v52 = vsub.f32 %v243_v40, %v251_v41  ;;  %v211_v53 = vrot.slane %v210_v44, 1  ;;  %v233_v54 = vrot.slane %v232_v45, 2  ;;  %v768_v56 = vsub.s32 0, %v692_v17 }
  0xfe   :  { %v612_v55 = vpop.eup %611  ;;  %v263_v57 = vmax.f32 %v255_v47, 0.0  ;;  %v770_v58 = vmul.f32 0.125, %v147_v48  ;;  %v170_v59 = vrot.slane %v169_v49, 1  ;;  %v773_v62 = vsub.s32 2, %v692_v17 }
  0xff   :  { %v614_v60 = vpop.eup %613  ;;  %v294_v61 = vcombine.low %v608_v46, %v612_v55  ;;  %v212_v63 = vadd.f32 %v211_v53, %v210_v44  ;;  %v234_v12 = vadd.f32 %v233_v54, %v232_v45  ;;  %v267_v1 = vmax.f32 %v259_v52, 0.0 }
 0x100   :  { %v310_v0 = vcombine.low %v610_v50, %v614_v60  ;;  %v248_v2 = vmul.f32 %v770_v58, %v770_v58  ;;  %v171_v3 = vadd.f32 %v170_v59, %v169_v49  ;;  %v272_v5 = vadd.f32 1e-05, %v263_v57 }
 0x101   :  { %v301_v4 = vrot.slane %v294_v61, %v765_v51  ;;  %v240_v6 = vmul.f32 0.125, %v212_v63  ;;  %v235_v7 = vrot.slane %v234_v12, 1  ;;  %v276_v25 = vadd.f32 1e-05, %v267_v1 }
 0x102   :  { %v317_v9 = vrot.slane %v310_v0, %v765_v51  ;;  %v784_v11 = vmul.f32 0.125, %v171_v3  ;;  %615 = vrsqrt.f32 %v272_v5  ;;  %v809_v57 = vsub.s32 1, %v692_v17 }
 0x103   :  { %v330_v18 = vmul.f32 %v301_v4, %v778_v16  ;;  %v256_v20 = vsub.f32 %v240_v6, %v248_v2  ;;  %v236_v21 = vadd.f32 %v235_v7, %v234_v12 }
 0x104   :  { %v332_v24 = vmul.f32 %v317_v9, %v778_v16  ;;  %v252_v34 = vmul.f32 %v784_v11, %v784_v11 }
 0x105   :  { %v341_v27 = vrot.slane %v330_v18, %v768_v56  ;;  %v345_v28 = vrot.slane %v330_v18, %v773_v62  ;;  %v264_v29 = vmax.f32 %v256_v20, 0.0  ;;  %v244_v33 = vmul.f32 0.125, %v236_v21 }
 0x106   :  { %v357_v31 = vrot.slane %v332_v24, %v768_v56  ;;  %v361_v32 = vrot.slane %v332_v24, %v773_v62 }
 0x107   :  { %v378_v35 = vmul.f32 %v341_v27, %v722_v8  ;;  %v379_v38 = vmul.f32 %v345_v28, %v726_v13  ;;  %v441_v39 = vrot.slane %v341_v27, %v768_v56  ;;  %v445_v40 = vrot.slane %v345_v28, %v768_v56 }
 0x108   :  { %v382_v41 = vmul.f32 %v357_v31, %v724_v10  ;;  %v383_v44 = vmul.f32 %v361_v32, %v728_v19  ;;  %v457_v45 = vrot.slane %v357_v31, %v768_v56  ;;  %v461_v46 = vrot.slane %v361_v32, %v768_v56 }
 0x109   :  { %v394_v47 = vcombine.low %v378_v35, %v379_v38  ;;  %v470_v48 = vmul.f32 %v441_v39, %v687_v14  ;;  %v471_v49 = vmul.f32 %v445_v40, %v700_v22  ;;  %v273_v8 = vadd.f32 1e-05, %v264_v29 }
 0x10a   :  { %v410_v50 = vcombine.low %v382_v41, %v383_v44  ;;  %v474_v13 = vmul.f32 %v457_v45, %v689_v15  ;;  %v475_v52 = vmul.f32 %v461_v46, %v702_v23  ;;  %v260_v53 = vsub.f32 %v244_v33, %v252_v34 }
 0x10b   :  { %v401_v10 = vrot.slane %v394_v47, %v765_v51  ;;  %617 = vrsqrt.f32 %v273_v8  ;;  %v812_v14 = vsub.s32 3, %v692_v17 }
 0x10c   :  { %v417_v19 = vrot.slane %v410_v50, %v765_v51  ;;  %v268_v54 = vmax.f32 %v260_v53, 0.0  ;;  %619 = vrsqrt.f32 %v276_v25  ;;  %v616_v15 = vpop.eup %615 }
 0x10d   :  { %v426_v55 = vrot.slane %v401_v10, 7 }
 0x10e   :  { %v428_v22 = vrot.slane %v417_v19, 7  ;;  %v277_v59 = vadd.f32 1e-05, %v268_v54 }
 0x10f   :  { %v434_v23 = vsub.f32 %v778_v16, %v426_v55 }
 0x110   :  { %v436_v60 = vsub.f32 %v778_v16, %v428_v22  ;;  %621 = vrsqrt.f32 %v277_v59 }
 0x111   :  { %v485_v61 = vrot.slane %v434_v23, %v809_v57  ;;  %v489_v63 = vrot.slane %v434_v23, %v812_v14 }
 0x112   :  { %v501_v12 = vrot.slane %v436_v60, %v809_v57  ;;  %v505_v0 = vrot.slane %v436_v60, %v812_v14 }
 0x113   :  { %v525_v17 = vrot.slane %v485_v61, %v809_v57  ;;  %v529_v1 = vrot.slane %v489_v63, %v809_v57 }
 0x114   :  { %v541_v2 = vrot.slane %v501_v12, %v809_v57  ;;  %v545_v3 = vrot.slane %v505_v0, %v809_v57 }
 0x115   :  { %v618_v4 = vpop.eup %617  ;;  %v824_v5 = vadd.f32 %v525_v17, %v470_v48  ;;  %v555_v6 = vadd.f32 %v529_v1, %v471_v49 }
 0x116   :  { %v826_v7 = vadd.f32 %v541_v2, %v474_v13  ;;  %v559_v9 = vadd.f32 %v545_v3, %v475_v52  ;;  %v302_v18 = vcombine.low %v616_v15, %v618_v4  ;;  %v620_v21 = vpop.eup %619 }
 0x117   :  { %v562_v20 = vsub.f32 0.0, %v555_v6 }
 0x118   :  { %v564_v24 = vsub.f32 0.0, %v559_v9  ;;  %v309_v25 = vrot.slane %v302_v18, %v765_v51 }
 0x119   :  { %v566_v27 = vmul.f32 1.442695, %v562_v20 }
 0x11a   :  { %v622_v28 = vpop.eup %621  ;;  %v570_v29 = vmul.f32 1.442695, %v564_v24  ;;  %v331_v31 = vmul.f32 %v309_v25, %v778_v16 }
 0x11b   :  { %623 = vpow2.f32 %v566_v27  ;;  %v318_v32 = vcombine.low %v620_v21, %v622_v28 }
 0x11c   :  { %625 = vpow2.f32 %v570_v29  ;;  %v349_v33 = vrot.slane %v331_v31, %v768_v56  ;;  %v353_v34 = vrot.slane %v331_v31, %v773_v62 }
 0x11d   :  { %v325_v35 = vrot.slane %v318_v32, %v765_v51 }
 0x11e   :  { %v380_v38 = vmul.f32 %v349_v33, %v753_v26  ;;  %v381_v39 = vmul.f32 %v353_v34, %v770_v58  ;;  %v449_v40 = vrot.slane %v349_v33, %v768_v56  ;;  %v453_v41 = vrot.slane %v353_v34, %v768_v56 }
 0x11f   :  { %v333_v44 = vmul.f32 %v325_v35, %v778_v16 }
 0x120   :  { %v402_v45 = vcombine.low %v380_v38, %v381_v39  ;;  %v472_v46 = vmul.f32 %v449_v40, %v714_v36  ;;  %v473_v47 = vmul.f32 %v453_v41, %v718_v42 }
 0x121   :  { %v365_v48 = vrot.slane %v333_v44, %v768_v56  ;;  %v369_v49 = vrot.slane %v333_v44, %v773_v62 }
 0x122   :  { %v409_v8 = vrot.slane %v402_v45, %v765_v51 }
 0x123   :  { %v384_v26 = vmul.f32 %v365_v48, %v756_v30  ;;  %v385_v58 = vmul.f32 %v369_v49, %v784_v11  ;;  %v465_v50 = vrot.slane %v365_v48, %v768_v56  ;;  %v469_v13 = vrot.slane %v369_v49, %v768_v56 }
 0x124   :  { %v427_v52 = vrot.slane %v409_v8, 7 }
 0x125   :  { %v624_v53 = vpop.eup %623  ;;  %v418_v10 = vcombine.low %v384_v26, %v385_v58  ;;  %v476_v36 = vmul.f32 %v465_v50, %v716_v37  ;;  %v477_v42 = vmul.f32 %v469_v13, %v720_v43 }
 0x126   :  { %v626_v19 = vpop.eup %625  ;;  %v574_v54 = vadd.f32 1.0, %v624_v53  ;;  %v435_v62 = vsub.f32 %v778_v16, %v427_v52 }
 0x127   :  { %v576_v55 = vadd.f32 1.0, %v626_v19  ;;  %v425_v30 = vrot.slane %v418_v10, %v765_v51 }
 0x128   :  { %627 = vrcp.f32 %v574_v54  ;;  %v493_v11 = vrot.slane %v435_v62, %v809_v57  ;;  %v497_v22 = vrot.slane %v435_v62, %v812_v14 }
 0x129   :  { %629 = vrcp.f32 %v576_v55  ;;  %v429_v56 = vrot.slane %v425_v30, 7 }
 0x12a   :  { %v533_v59 = vrot.slane %v493_v11, %v809_v57  ;;  %v537_v37 = vrot.slane %v497_v22, %v809_v57 }
 0x12b   :  { %v437_v43 = vsub.f32 %v778_v16, %v429_v56 }
 0x12c   :  { %v556_v15 = vadd.f32 %v533_v59, %v472_v46  ;;  %v557_v23 = vadd.f32 %v537_v37, %v473_v47 }
 0x12d   :  { %v509_v60 = vrot.slane %v437_v43, %v809_v57  ;;  %v513_v61 = vrot.slane %v437_v43, %v812_v14 }
 0x12e   :  { %v563_v51 = vsub.f32 0.0, %v557_v23 }
 0x12f   :  { %v549_v63 = vrot.slane %v509_v60, %v809_v57  ;;  %v553_v12 = vrot.slane %v513_v61, %v809_v57 }
 0x130   :  { %v568_v0 = vmul.f32 1.442695, %v563_v51 }
 0x131   :  { %v560_v17 = vadd.f32 %v549_v63, %v476_v36  ;;  %v561_v1 = vadd.f32 %v553_v12, %v477_v42 }
 0x132   :  { %v628_v2 = vpop.eup %627  ;;  %631 = vpow2.f32 %v568_v0 }
 0x133   :  { %v630_v3 = vpop.eup %629  ;;  %v582_v16 = vmul.f32 %v628_v2, %v824_v5  ;;  %v565_v4 = vsub.f32 0.0, %v561_v1 }
 0x134   :  { %v584_v6 = vmul.f32 %v630_v3, %v826_v7 }
 0x135   :  { %587 = vst.msk [vmem:[%s881_s3] sm:$0xff] %vm586_vm1, %v582_v16  ;;  %v572_v14 = vmul.f32 1.442695, %v565_v4 }
 0x136   :  { %589 = vst.msk [vmem:[%s881_s3 + $0x10] sm:$0xff] %vm586_vm1, %v584_v6 }
 0x137   :  { %633 = vpow2.f32 %v572_v14 }
 0x13c   :  { %v632_v57 = vpop.eup %631 }
 0x13d   :  { %v575_v9 = vadd.f32 1.0, %v632_v57 }
 0x13f   :  { %635 = vrcp.f32 %v575_v9 }
 0x141   :  { %v634_v18 = vpop.eup %633 }
 0x142   :  { %v577_v5 = vadd.f32 1.0, %v634_v18 }
 0x144   :  { %637 = vrcp.f32 %v577_v5 }
 0x149   :  { %v636_v20 = vpop.eup %635 }
 0x14a   :  { %v583_v7 = vmul.f32 %v636_v20, %v556_v15 }
 0x14c   :  { %588 = vst.msk [vmem:[%s881_s3 + $0x8] sm:$0xff] %vm586_vm1, %v583_v7 }
 0x14e   :  { %v638_v21 = vpop.eup %637 }
 0x14f   :  { %v585_v24 = vmul.f32 %v638_v21, %v560_v17 }
 0x151   :  { %590 = vst.msk [vmem:[%s881_s3 + $0x18] sm:$0xff] %vm586_vm1, %v585_v24 }

</bundles_post_ra>
